<compile_context>
chip_gen: v7x
topology: tpu7x:2x2x1
jax: 0.10.0
libtpu: 0.0.40
codegen_flags: <defaults>
</compile_context>

<pallas_src>
import functools

import jax
import jax.numpy as jnp
from jax import lax
from jax.experimental import pallas as pl
from jax.experimental.pallas import tpu as pltpu


def _round_up(v: int, m: int) -> int:
    return ((v + m - 1) // m) * m


def _pick_tile_rows(n: int, c_lanes: int, itemsize: int) -> int:
    """Row tile (multiple of the sublane tile) sized by bytes, up to 8K rows."""
    sub = 16 if itemsize == 2 else 8
    budget = 8 * 1024 * 1024                      # per logits buffer (x2 pipelined)
    tn = budget // max(1, c_lanes * itemsize)
    tn = max(sub, (tn // sub) * sub)
    tn = min(tn, 8192)                            # bound the targets/VMEM footprint
    tn = min(tn, _round_up(n, sub))               # don't over-pad tiny batches
    return max(sub, (tn // sub) * sub)


def _lsce_kernel(preds_ref, target_ref, out_ref, *,
                 n_valid: int, tile_rows: int, mask_rows: bool):
    i = pl.program_id(0)

    x_in = preds_ref[...]                                     # (TN, C), native dtype
    c = x_in.shape[-1]

    # (1, C) iota broadcast over rows; no (TN, C) int32 tensor is materialized.
    cols = lax.broadcasted_iota(jnp.int32, (1, c), 1)
    tgt = target_ref[...]                                     # (TN, 1) int32
    onehot = cols == tgt                                      # (TN, C) bool

    # Row max and one-hot gather in the input dtype (exact, cheaper bf16 VALU).
    m = jnp.max(x_in, axis=-1, keepdims=True).astype(jnp.float32)          # (TN, 1)
    zero = jnp.zeros((), x_in.dtype)
    x_at_t = jnp.sum(jnp.where(onehot, x_in, zero), axis=-1,
                     keepdims=True).astype(jnp.float32)                    # (TN, 1)

    # f32 only where precision matters: row sum, exp/logsumexp, accumulation.
    x = x_in.astype(jnp.float32)
    row_sum = jnp.sum(x, axis=-1, keepdims=True)                           # (TN, 1)
    lse = jnp.log(jnp.sum(jnp.exp(x - m), axis=-1, keepdims=True))
    s = m + lse                                                            # logsumexp

    sum_neg_logp = jnp.float32(c) * s - row_sum               # sum_c(-log p)
    nll_row = s - x_at_t                                      # -log p[target]

    if mask_rows:                                             # static: ragged last tile
        row_ids = i * tile_rows + lax.broadcasted_iota(jnp.int32, (tile_rows, 1), 0)
        valid = row_ids < n_valid
        loss_tile = jnp.sum(jnp.where(valid, sum_neg_logp, 0.0))
        nll_tile = jnp.sum(jnp.where(valid, nll_row, 0.0))
    else:
        loss_tile = jnp.sum(sum_neg_logp)
        nll_tile = jnp.sum(nll_row)

    # Per-tile partials -> lane 0 = loss sum, lane 1 = nll sum (reduced in wrapper).
    lanes = lax.broadcasted_iota(jnp.int32, (8, 128), 1)
    out_ref[0] = jnp.where(lanes == 0, loss_tile,
                           jnp.where(lanes == 1, nll_tile, 0.0))


def label_smoothing_cross_entropy(preds, target, epsilon: float = 0.1,
                                  tile_rows: int | None = None):
    """preds: (N, C) float logits (f32 or bf16); target: (N,) int labels.
    Matches LabelSmoothingCrossEntropy(epsilon, reduction='mean')."""
    n, c = preds.shape
    itemsize = jnp.dtype(preds.dtype).itemsize
    sub = 16 if itemsize == 2 else 8
    c_lanes = _round_up(c, 128)                               # VMEM lane footprint only

    if tile_rows is None:
        tn = _pick_tile_rows(n, c_lanes, itemsize)
    else:
        tn = max(sub, _round_up(int(tile_rows), sub))
    num_tiles = pl.cdiv(n, tn)

    tgt = target.astype(jnp.int32).reshape(n, 1)              # cheap; logits NOT padded

    kernel = functools.partial(
        _lsce_kernel, n_valid=n, tile_rows=tn, mask_rows=(n % tn != 0))

    # Explicit scoped-VMEM budget (double-buffered logits + targets + partials).
    logits_buf = tn * c_lanes * itemsize
    tgt_buf = tn * 128 * 4
    out_buf = 8 * 128 * 4
    vmem_limit = min(2 * (logits_buf + tgt_buf + out_buf) + (4 << 20), 128 << 20)

    partials = pl.pallas_call(
        kernel,
        out_shape=jax.ShapeDtypeStruct((num_tiles, 8, 128), jnp.float32),
        grid=(num_tiles,),
        in_specs=[
            pl.BlockSpec((tn, c), lambda i: (i, 0)),          # full-width logits tile
            pl.BlockSpec((tn, 1), lambda i: (i, 0)),          # targets tile
        ],
        out_specs=pl.BlockSpec((1, 8, 128), lambda i: (i, 0, 0)),
        compiler_params=pltpu.CompilerParams(
            dimension_semantics=("parallel",),                # megacore-shardable (v7x)
            vmem_limit_bytes=int(vmem_limit),
        ),
        cost_estimate=pl.CostEstimate(
            flops=int(6 * n * c),
            transcendentals=int(n * c + n),
            bytes_accessed=int(n * c * itemsize + n * 4 + num_tiles * out_buf),
        ),
    )(preds, tgt)

    loss_sum = jnp.sum(partials[:, 0, 0])
    nll_sum = jnp.sum(partials[:, 0, 1])
    # epsilon * (mean(sum_c -logp) / C) + (1 - epsilon) * mean(nll)
    return (jnp.float32(epsilon / (n * c)) * loss_sum
            + jnp.float32((1.0 - epsilon) / n) * nll_sum)


def _reference(preds, target, epsilon=0.1):
    logp = jax.nn.log_softmax(preds.astype(jnp.float32), axis=-1)
    n_classes = preds.shape[-1]
    loss = jnp.mean(-jnp.sum(logp, axis=-1))
    nll = jnp.mean(-jnp.take_along_axis(logp, target[:, None], axis=-1)[:, 0])
    return epsilon * (loss / n_classes) + (1 - epsilon) * nll


if __name__ == "__main__":
    key = jax.random.PRNGKey(0)
    k1, k2 = jax.random.split(key)

    # Small demo shapes that still exercise row tiling (3 grid steps, ragged
    # last tile masked) and a non-128-multiple class dim (50 classes).
    N, C = 40, 50
    preds = jax.random.normal(k1, (N, C), dtype=jnp.float32)
    target = jax.random.randint(k2, (N,), 0, C, dtype=jnp.int32)

    out = label_smoothing_cross_entropy(preds, target, epsilon=0.1, tile_rows=16)
    out = jax.block_until_ready(out)
    ref = _reference(preds, target, epsilon=0.1)
    assert jnp.allclose(out, ref, rtol=1e-5, atol=1e-5), (out, ref)

    # Auto-tiled path with bf16 logits (halved HBM traffic; f32 math where it matters).
    preds_bf16 = preds.astype(jnp.bfloat16)
    out2 = jax.block_until_ready(
        label_smoothing_cross_entropy(preds_bf16, target, epsilon=0.1))
    ref2 = _reference(preds_bf16.astype(jnp.float32), target, epsilon=0.1)
    assert jnp.allclose(out2, ref2, rtol=1e-4, atol=1e-4), (out2, ref2)

    print("KERNEL_OK")
</pallas_src>

<mosaic_0001>
module attributes {stable_mosaic.version = 11 : i64} {
  func.func @_lsce_kernel(%arg0: i32, %arg1: memref<16x50xf32, #tpu.memory_space<vmem>>, %arg2: memref<16x1xi32, #tpu.memory_space<vmem>>, %arg3: memref<1x8x128xf32, #tpu.memory_space<vmem>>) attributes {dimension_semantics = [#tpu.dimension_semantics<parallel>], iteration_bounds = array<i64: 3>, scalar_prefetch = 0 : i64, scratch_operands = 0 : i64, tpu.core_type = #tpu.core_type<tc>, window_params = [{transform_indices = @transform_0, window_bounds = array<i64: 16, 50>}, {transform_indices = @transform_1, window_bounds = array<i64: 16, 1>}, {transform_indices = @transform_2, window_bounds = array<i64: 1, 8, 128>}]} {
    %c0 = arith.constant 0 : index
    %c0_0 = arith.constant 0 : index
    %0 = vector.load %arg1[%c0, %c0_0] : memref<16x50xf32, #tpu.memory_space<vmem>>, vector<16x50xf32>
    %1 = tpu.iota {dimensions = array<i32: 1>} : vector<1x50xi32>
    %c0_1 = arith.constant 0 : index
    %c0_2 = arith.constant 0 : index
    %2 = vector.load %arg2[%c0_1, %c0_2] : memref<16x1xi32, #tpu.memory_space<vmem>>, vector<16x1xi32>
    %3 = vector.broadcast %1 : vector<1x50xi32> to vector<16x50xi32>
    %4 = vector.broadcast %2 : vector<16x1xi32> to vector<16x50xi32>
    %5 = arith.cmpi eq, %3, %4 : vector<16x50xi32>
    %cst = arith.constant dense<0xFF800000> : vector<16xf32>
    %6 = vector.multi_reduction <maximumf>, %0, %cst [1] : vector<16x50xf32> to vector<16xf32>
    %7 = vector.shape_cast %6 : vector<16xf32> to vector<16x1xf32>
    %cst_3 = arith.constant 0.000000e+00 : f32
    %8 = vector.broadcast %cst_3 : f32 to vector<16x50xf32>
    %9 = arith.select %5, %0, %8 : vector<16x50xi1>, vector<16x50xf32>
    %cst_4 = arith.constant dense<0.000000e+00> : vector<16xf32>
    %10 = vector.multi_reduction <add>, %9, %cst_4 [1] : vector<16x50xf32> to vector<16xf32>
    %11 = vector.shape_cast %10 : vector<16xf32> to vector<16x1xf32>
    %cst_5 = arith.constant dense<0.000000e+00> : vector<16xf32>
    %12 = vector.multi_reduction <add>, %0, %cst_5 [1] : vector<16x50xf32> to vector<16xf32>
    %13 = vector.shape_cast %12 : vector<16xf32> to vector<16x1xf32>
    %14 = vector.broadcast %7 : vector<16x1xf32> to vector<16x50xf32>
    %15 = arith.subf %0, %14 : vector<16x50xf32>
    %16 = math.exp %15 : vector<16x50xf32>
    %cst_6 = arith.constant dense<0.000000e+00> : vector<16xf32>
    %17 = vector.multi_reduction <add>, %16, %cst_6 [1] : vector<16x50xf32> to vector<16xf32>
    %18 = vector.shape_cast %17 : vector<16xf32> to vector<16x1xf32>
    %19 = math.log %18 : vector<16x1xf32>
    %20 = arith.addf %7, %19 : vector<16x1xf32>
    %cst_7 = arith.constant 5.000000e+01 : f32
    %21 = vector.broadcast %cst_7 : f32 to vector<16x1xf32>
    %22 = arith.mulf %21, %20 : vector<16x1xf32>
    %23 = arith.subf %22, %13 : vector<16x1xf32>
    %24 = arith.subf %20, %11 : vector<16x1xf32>
    %c16_i32 = arith.constant 16 : i32
    %25 = arith.muli %arg0, %c16_i32 : i32
    %26 = tpu.iota {dimensions = array<i32: 0>} : vector<16x1xi32>
    %27 = vector.broadcast %25 : i32 to vector<16x1xi32>
    %28 = arith.addi %27, %26 : vector<16x1xi32>
    %c40_i32 = arith.constant 40 : i32
    %29 = vector.broadcast %c40_i32 : i32 to vector<16x1xi32>
    %30 = arith.cmpi slt, %28, %29 : vector<16x1xi32>
    %cst_8 = arith.constant 0.000000e+00 : f32
    %31 = vector.broadcast %cst_8 : f32 to vector<16x1xf32>
    %32 = arith.select %30, %23, %31 : vector<16x1xi1>, vector<16x1xf32>
    %33 = vector.shape_cast %32 : vector<16x1xf32> to vector<1x16x1xf32>
    %cst_9 = arith.constant dense<0.000000e+00> : vector<1xf32>
    %34 = vector.multi_reduction <add>, %33, %cst_9 [1, 2] : vector<1x16x1xf32> to vector<1xf32>
    %35 = vector.shape_cast %34 : vector<1xf32> to vector<1x1x1xf32>
    %36 = vector.extract %35[0, 0, 0] : f32 from vector<1x1x1xf32>
    %cst_10 = arith.constant 0.000000e+00 : f32
    %37 = vector.broadcast %cst_10 : f32 to vector<16x1xf32>
    %38 = arith.select %30, %24, %37 : vector<16x1xi1>, vector<16x1xf32>
    %39 = vector.shape_cast %38 : vector<16x1xf32> to vector<1x16x1xf32>
    %cst_11 = arith.constant dense<0.000000e+00> : vector<1xf32>
    %40 = vector.multi_reduction <add>, %39, %cst_11 [1, 2] : vector<1x16x1xf32> to vector<1xf32>
    %41 = vector.shape_cast %40 : vector<1xf32> to vector<1x1x1xf32>
    %42 = vector.extract %41[0, 0, 0] : f32 from vector<1x1x1xf32>
    %43 = tpu.iota {dimensions = array<i32: 1>} : vector<8x128xi32>
    %c0_i32 = arith.constant 0 : i32
    %44 = vector.broadcast %c0_i32 : i32 to vector<8x128xi32>
    %45 = arith.cmpi eq, %43, %44 : vector<8x128xi32>
    %c1_i32 = arith.constant 1 : i32
    %46 = vector.broadcast %c1_i32 : i32 to vector<8x128xi32>
    %47 = arith.cmpi eq, %43, %46 : vector<8x128xi32>
    %cst_12 = arith.constant 0.000000e+00 : f32
    %48 = vector.broadcast %42 : f32 to vector<8x128xf32>
    %49 = vector.broadcast %cst_12 : f32 to vector<8x128xf32>
    %50 = arith.select %47, %48, %49 : vector<8x128xi1>, vector<8x128xf32>
    %51 = vector.broadcast %36 : f32 to vector<8x128xf32>
    %52 = arith.select %45, %51, %50 : vector<8x128xi1>, vector<8x128xf32>
    %c0_13 = arith.constant 0 : index
    %c0_14 = arith.constant 0 : index
    %c0_15 = arith.constant 0 : index
    %53 = vector.load %arg3[%c0_13, %c0_14, %c0_15] : memref<1x8x128xf32, #tpu.memory_space<vmem>>, vector<1x8x128xf32>
    %54 = vector.shape_cast %53 : vector<1x8x128xf32> to vector<8x128xf32>
    %55 = vector.shape_cast %52 : vector<8x128xf32> to vector<1x8x128xf32>
    tpu.vector_store %arg3[%c0_13, %c0_14, %c0_15], %55 {strides = array<i32>} : memref<1x8x128xf32, #tpu.memory_space<vmem>>, vector<1x8x128xf32>,
    return
  }
  func.func @transform_0(%arg0: i32) -> (i32, i32) {
    %c0_i32 = arith.constant 0 : i32
    %c0_i32_0 = arith.constant 0 : i32
    return %arg0, %c0_i32 : i32, i32
  }
  func.func @transform_1(%arg0: i32) -> (i32, i32) {
    %c0_i32 = arith.constant 0 : i32
    %c0_i32_0 = arith.constant 0 : i32
    return %arg0, %c0_i32 : i32, i32
  }
  func.func @transform_2(%arg0: i32) -> (i32, i32, i32) {
    %c0_i32 = arith.constant 0 : i32
    %c0_i32_0 = arith.constant 0 : i32
    %c0_i32_1 = arith.constant 0 : i32
    return %arg0, %c0_i32, %c0_i32_0 : i32, i32, i32
  }
}

</mosaic_0001>

<bundles_post_ra>
// kernel: tpu_custom_call.1
= control target key start
LH: loop header
LB: loop body
LE: loop exit
PB: predicated region body
PF: predicated region fallthrough
CT: control target
= control target key end

     0   :  { %7 = vsyncpa [#allocation3], 0  ;;  %s661_s0 = inlined_call_operand.vmem [shape: f32[40,50], index: 0, kind: input, shape index: {}]   ;;  %s662_s1 = inlined_call_operand.vmem [shape: s32[40,1], index: 1, kind: input, shape index: {}]   ;;  %s663_s2 = inlined_call_operand.hbm [shape: f32[3,8,128], index: 2, kind: output, shape index: {}]  }
   0x1   :  { %9 = vsyncpa [#allocation3 + $0x1], 0  ;;  %s544_s9 = smov 0   ;;  %s546_s10 = smov 0  }
   0x2   :  { %s548_s11 = smov 0   ;;  %s550_s12 = smov 0  }
   0x3 LB: > { %s565_s13 = sadd.s32 4294967295, %s525_s12   ;;  %s395_s14 = sadd.s32 4294967294, %s525_s12   ;;  %s525_s12 = sphi %s550_s12, %s669_s12   ;;  %s521_s11 = sphi %s548_s11, %s668_s11   ;;  %s517_s10 = sphi %s546_s10, %s667_s10   ;;  %s513_s9 = sphi %s544_s9, %s666_s9  }
   0x4   : > { %s569_s15 = sadd.s32 1, %s525_s12   ;;  %s74_s16 = sadd.s32 1, %s521_s11 }
   0x5   : > { %s71_s17 = ssub.s32 %s525_s12, %s569_s15  ;;  %p84_p0 = scmp.ne.s32.totalorder %s521_s11, %s517_s10 }
   0x6   : > { %p72_p1 = scmp.eq.s32.totalorder %s71_s17, 0  ;;  %p85_p2 = scmp.eq.s32.totalorder %s565_s13, 2 }
   0x7   : > { %p90_p3 = scmp.ne.s32.totalorder %s517_s10, %s513_s9  ;;  %p91_p4 = scmp.eq.s32.totalorder %s395_s14, 2 }
   0x8   : > { %s580_s18 = scalar_select %p72_p1, %s521_s11, %s74_s16  }
   0x9   : > { %p582_p5 = por %p85_p2, %p84_p0  ;;  %p586_p6 = por %p91_p4, %p90_p3 }
   0xa   : > { %p398_p7 = scmp.ge.s32.totalorder %s525_s12, 1  ;;  %p143_p8 = scmp.lt.s32.totalorder %s525_s12, 4 }
   0xc   : > { %p144_p9 = pnand %p398_p7, %p143_p8 }
   0xd   : > { %s400_s21 = sshll.u32 (!%p144_p9), %s565_s13, 1  ;;  %v527_v0 = vmov (!%p144_p9), 0   ;;  %vm220_vm0 = vcmask (!%p144_p9), 408576   ;;  %v208_v11 = vlaneseq (!%p144_p9)  ;;  %s404_s29 = sshll.u32 (!%p144_p9), %s565_s13, 4  ;;  %vm276_vm5 = vcmask (!%p144_p9), 7168  }
   0xe   : > { %147 = sbr.rel (%p144_p9) target bundleno = 578 (0x242), region = 28  ;;  %p183_p10 = scmp.lt.s32.totalorder (!%p144_p9), %s400_s21, 4  ;;  %453 = vset.pattern.permute.xlu1 (!%p144_p9), %v527_v0  ;;  %454 = vset.pattern.permute.xlu0 (!%p144_p9), %v527_v0  ;;  %v269_v37 = vstv (!%p144_p9), %s404_s29 }
   0xf   : > { %v601_v15 = vand.u32 (!%p144_p9), 127, %v208_v11  ;;  %v267_v32 = vshrl.u32 (!%p144_p9), %v208_v11, 7  ;;  %s175_s30 = sand.u32 (!%p144_p9), 1, %s517_s10   ;;  %s406_s4 = sshll.u32 (!%p144_p9), %s565_s13, 7 }
  0x10   : > { %s399_s3 = sshll.u32 (!%p144_p9), %s175_s30, 3  ;;  %s619_s17 = scalar_lea.hbm (!%p144_p9), %s663_s2, %s406_s4 }
  0x11   : > { %v268_v34 = vadd.s32 (!%p144_p9), 8, %v267_v32  ;;  %v270_v41 = vadd.s32 (!%p144_p9), %v269_v37, %v267_v32  ;;  %vm304_vm6 = vcmp.eq.s32.totalorder (!%p144_p9), %v601_v15, 1  ;;  %s177_s6 = scalar_lea.vmem (!%p144_p9), [#allocation2], %s399_s3  ;;  %vm303_vm7 = vcmp.eq.s32.totalorder (!%p144_p9), %v601_v15, 0  ;;  %s311_s13 = scalar_lea.sflag (!%p144_p9), [#allocation3], %s175_s30 }
  0x12   : > { %s324_s7 = sshll.u32 (!%p144_p9), %s177_s6, 4  ;;  %s621_s7 = int_to_ptr.vmem [resolvable:$true] %s324_s7 }
  0x13   : > { %v271_v42 = vadd.s32 (!%p144_p9), %v269_v37, %v268_v34  ;;  %vm272_vm3 = vcmp.lt.s32.totalorder (!%p144_p9), %v270_v41, 40 }
  0x15   : > { %s671_s21 = smov (!%p183_p10, %s400_s21), 4  ;;  %vm273_vm4 = vcmp.lt.s32.totalorder %v271_v42, 40 }
  0x16   : > { %s401_s22 = sshll.u32 %s671_s21, 3  ;;  %s463_s21 = scalar_lea.vmem %s621_s7, 128 }
  0x17   : > { %s186_s25 = scalar_lea.vmem %s661_s0, %s401_s22  ;;  %s200_s28 = scalar_lea.vmem %s662_s1, %s401_s22 }
  0x18   : > { %v206_v1 = vld [vmem:[%s186_s25] sm:$0xff]  ;;  %v207_v2 = vld [vmem:[%s186_s25 + $0x8] sm:$0xff]  ;;  %p464_p11 = scmp.ne.s32.totalorder %s621_s7, %s463_s21  ;;  %s528_s22 = smov [#allocation2]  }
  0x19   : > { %v210_v3 = vld [vmem:[%s200_s28] sm:$0xff]  ;;  %v221_v4 = vsel %vm220_vm0, %v206_v1, -inf  ;;  %v211_v5 = vld [vmem:[%s200_s28 + $0x8] sm:$0xff]  ;;  %v224_v6 = vsel %vm220_vm0, %v207_v2, -inf  ;;  %v235_v25 = vsel %vm220_vm0, %v206_v1, 0.0  ;;  %v238_v26 = vsel %vm220_vm0, %v207_v2, 0.0 }
  0x1a   : > { %213 = vperm.xlu1 %453, %v210_v3   ;;  %222 = vmax.xlane.f32.xlu0 %v221_v4  ;;  %p465_p12 = pnand %p464_p11, %p582_p5  ;;  %s467_s23 = sshll.u32 %s528_s22, 4  ;;  %s468_s23 = int_to_ptr.vmem [resolvable:$false] %s467_s23 }
  0x1b   : > { %s469_s24 = scalar_lea.vmem %s468_s23, 256  ;;  %p470_p0 = scmp.lt.s32.totalorder %s621_s7, %s468_s23 }
  0x1c   : > { %p466_p13 = pneg %p465_p12  ;;  %p471_p1 = scmp.lt.s32.totalorder %s469_s24, %s463_s21 }
  0x1e   : > { %216 = vperm.xlu1 %453, %v211_v5   ;;  %225 = vmax.xlane.f32.xlu0 %v224_v6  ;;  %p472_p2 = por %p471_p1, %p470_p0 }
  0x20   : > { %p473_p3 = pnand %p472_p2, %p466_p13 }
  0x99   : > { %v214_v14 = vpop.permute.xlu1 %213 }
  0x9a   : > { %vm218_vm1 = vcmp.eq.s32.totalorder %v601_v15, %v214_v14 }
  0x9b   : > { %v227_v18 = vsel %vm218_vm1, %v206_v1, 0.0 }
  0x9c   : > { %v229_v20 = vsel %vm220_vm0, %v227_v18, 0.0 }
  0x9d   : > { %v217_v16 = vpop.permute.xlu1 %216 }
  0x9e   : > { %vm219_vm2 = vcmp.eq.s32.totalorder %v601_v15, %v217_v16 }
  0x9f   : > { %v228_v22 = vsel %vm219_vm2, %v207_v2, 0.0 }
  0xa0   : > { %v232_v24 = vsel %vm220_vm0, %v228_v22, 0.0 }
  0xa7   : > { %v223_v7 = vpop.xlane.xlu0 %222 }
  0xa8   : > { %v241_v8 = vsub.f32 %v206_v1, %v223_v7 }
  0xaa   : > { %v243_v9 = vmul.f32 1.442695, %v241_v8 }
  0xab   : > { %v226_v10 = vpop.xlane.xlu0 %225 }
  0xac   : > { %455 = vpow2.f32 %v243_v9  ;;  %v242_v12 = vsub.f32 %v207_v2, %v226_v10 }
  0xae   : > { %v245_v13 = vmul.f32 1.442695, %v242_v12 }
  0xb0   : > { %457 = vpow2.f32 %v245_v13 }
  0xb6   : > { %v456_v17 = vpop.eup %455 }
  0xb7   : > { %v247_v19 = vsel %vm220_vm0, %v456_v17, 0.0 }
  0xb8   : > { %248 = vadd.xlane.f32.xlu0 %v247_v19 }
  0xba   : > { %v458_v21 = vpop.eup %457 }
  0xbb   : > { %v250_v23 = vsel %vm220_vm0, %v458_v21, 0.0 }
  0xbc   : > { %251 = vadd.xlane.f32.xlu1 %v250_v23  ;;  %230 = vadd.xlane.f32.xlu0 %v229_v20 }
  0xc0   : > { %233 = vadd.xlane.f32.xlu0 %v232_v24 }
  0xc4   : > { %236 = vadd.xlane.f32.xlu0 %v235_v25 }
  0xc8   : > { %239 = vadd.xlane.f32.xlu0 %v238_v26 }
 0x145   : > { %v249_v27 = vpop.xlane.xlu0 %248 }
 0x146   : > { %459 = vlog2.f32 %v249_v27 }
 0x149   : > { %v252_v28 = vpop.xlane.xlu1 %251  ;;  %v231_v29 = vpop.xlane.xlu0 %230 }
 0x14a   : > { %461 = vlog2.f32 %v252_v28 }
 0x14d   : > { %v234_v30 = vpop.xlane.xlu0 %233 }
 0x150   : > { %v460_v31 = vpop.eup %459 }
 0x151   : > { %v254_v33 = vmul.f32 0.6931472, %v460_v31  ;;  %v237_v35 = vpop.xlane.xlu0 %236 }
 0x153   : > { %v257_v36 = vadd.f32 %v254_v33, %v223_v7 }
 0x154   : > { %v462_v38 = vpop.eup %461 }
 0x155   : > { %v256_v39 = vmul.f32 0.6931472, %v462_v38  ;;  %v259_v40 = vmul.f32 50.0, %v257_v36  ;;  %v240_v45 = vpop.xlane.xlu0 %239  ;;  %v263_v48 = vsub.f32 %v257_v36, %v231_v29 }
 0x157   : > { %v258_v43 = vadd.f32 %v256_v39, %v226_v10  ;;  %v261_v44 = vsub.f32 %v259_v40, %v237_v35  ;;  %v289_v55 = vsel %vm272_vm3, %v263_v48, 0.0 }
 0x158   : > { %v291_v58 = vsel %vm276_vm5, %v289_v55, 0.0 }
 0x159   : > { %v264_v46 = vsub.f32 %v258_v43, %v234_v30  ;;  %v260_v47 = vmul.f32 50.0, %v258_v43  ;;  %v274_v49 = vsel %vm272_vm3, %v261_v44, 0.0 }
 0x15a   : > { %v277_v53 = vsel %vm276_vm5, %v274_v49, 0.0 }
 0x15b   : > { %v262_v50 = vsub.f32 %v260_v47, %v240_v45  ;;  %v290_v51 = vsel %vm273_vm4, %v264_v46, 0.0 }
 0x15c   : > { %v292_v57 = vsel %vm276_vm5, %v290_v51, 0.0 }
 0x15d   : > { %v275_v52 = vsel %vm273_vm4, %v262_v50, 0.0  ;;  %v293_v59 = vadd.f32 %v292_v57, %v291_v58 }
 0x15e   : > { %v278_v54 = vsel %vm276_vm5, %v275_v52, 0.0 }
 0x15f   : > { %v279_v56 = vadd.f32 %v278_v54, %v277_v53 }
 0x161   : > { %280 = vadd.xlane.f32.xlu0 %v279_v56 }
 0x165   : > { %294 = vadd.xlane.f32.xlu0 %v293_v59 }
 0x1ee   : > { %v281_v60 = vpop.xlane.xlu0 %280 }
 0x1ef   : > { %v282_v61 = vrot.slane %v281_v60, 4 }
 0x1f1   : > { %v283_v62 = vadd.f32 %v282_v61, %v281_v60 }
 0x1f2   : > { %v295_v63 = vpop.xlane.xlu0 %294 }
 0x1f3   : > { %v284_v0 = vrot.slane %v283_v62, 2  ;;  %v296_v1 = vrot.slane %v295_v63, 4 }
 0x1f5   : > { %v297_v2 = vadd.f32 %v296_v1, %v295_v63  ;;  %v285_v3 = vadd.f32 %v284_v0, %v283_v62 }
 0x1f7   : > { %v298_v4 = vrot.slane %v297_v2, 2  ;;  %v286_v5 = vrot.slane %v285_v3, 1 }
 0x1f9   : > { %v299_v6 = vadd.f32 %v298_v4, %v297_v2  ;;  %v287_v7 = vadd.f32 %v286_v5, %v285_v3 }
 0x1fb   : > { %409 = vpush %v287_v7  ;;  %v300_v8 = vrot.slane %v299_v6, 1 }
 0x1fd   : > { %v301_v9 = vadd.f32 %v300_v8, %v299_v6 }
 0x1ff   : > { %411 = vpush %v301_v9 }
 0x22c   : > { %s410_s5 = spop %409 }
 0x22d   : > { %v307_v11 = vstv %s410_s5 }
 0x230   : > { %s412_s8 = spop %411 }
 0x231   : > { %v305_v10 = vstv %s412_s8 }
 0x232   : > { %v306_v12 = vsel %vm304_vm6, %v305_v10, 0.0 }
 0x233   : > { %v308_v13 = vsel %vm303_vm7, %v307_v11, %v306_v12 }
 0x234   : > { %309 = vst [vmem:[%s177_s6] sm:$0xff] %v308_v13 }
 0x235   : > { %476 = shalt.err (!%p473_p3)
}
 0x236   : > { %s477_s25 = scalar_lea.hbm %s619_s17, 128  ;;  %s481_s28 = scalar_lea.hbm %s663_s2, 384 }
 0x237   : > { %p478_p4 = scmp.ne.s32.totalorder %s619_s17, %s477_s25  ;;  %p482_p9 = scmp.lt.u32.totalorder %s619_s17, %s663_s2 }
 0x238   : > { %p483_p10 = scmp.lt.u32.totalorder %s481_s28, %s477_s25  ;;  %p485_p12 = scmp.lt.u32.totalorder %s477_s25, %s619_s17 }
 0x239   : > { %p479_p7 = pnand %p478_p4, %p582_p5 }
 0x23a   : > { %p484_p11 = por %p483_p10, %p482_p9 }
 0x23b   : > { %p480_p8 = pneg %p479_p7 }
 0x23c   : > { %p486_p13 = por %p485_p12, %p484_p11 }
 0x23e   : > { %p487_p0 = pnand %p486_p13, %p480_p8 }
 0x240   : > { %490 = shalt.err (!%p487_p0)
}
 0x241   : > { %413 = dma.vmem_to_hbm [thread:$0]  (%p582_p5), %s621_s7, 128, %s619_s17, %s311_s13  }
 0x242 PF: > { %p419_p1 = scmp.ge.s32.totalorder %s525_s12, 2  ;;  %s336_s3 = sand.u32 1, %s513_s9  }
 0x243   : > { %s337_s4 = scalar_lea.sflag [#allocation3], %s336_s3 }
 0x244   : > { %p416_p2 = pnand %p419_p1, %p586_p6 }
 0x246   : > { %508 = dma.done.wait (!%p416_p2), %s337_s4, 128  }
 0x247   : > { %510 = vsyncadd (!%p416_p2), %s337_s4, 4294967168  ;;  %p12_p3 = scmp.ge.s32.totalorder %s569_s15, 5   ;;  %s666_s9 = smov %s517_s10 }
 0x248   : > { %s667_s10 = smov %s521_s11  ;;  %s668_s11 = smov %s580_s18 }
 0x249   : > { %s669_s12 = smov %s569_s15  ;;  %14 = sbr.rel (!%p12_p3) target bundleno = 3 (0x3), region = 66 }
 0x250   :  { %342 = vsyncpa [#allocation3], 1 }
 0x251   :  { %344 = vsyncpa [#allocation3 + $0x1], 1 }

</bundles_post_ra>
